<compile_context>
chip_gen: v6e
topology: v6e:2x2x1
jax: 0.10.0
libtpu: 0.0.40
codegen_flags: <defaults>
</compile_context>

<pallas_src>
import math
import functools

import jax
import jax.numpy as jnp
from jax import lax
from jax.experimental import pallas as pl
from jax.experimental.pallas import tpu as pltpu


NEG_INF = -1e30  # large finite negative: avoids inf-inf NaNs in online softmax


def _pick_tile(dim, target, multiple):
    """Largest tile t <= target with dim % t == 0 and t % multiple == 0.

    Falls back to the full dimension (always a legal block) if no such tile
    exists; tile targets are small enough that this cannot blow VMEM for the
    shapes used here.
    """
    if dim <= target:
        return dim
    t = (target // multiple) * multiple
    while t >= multiple:
        if dim % t == 0:
            return t
        t -= multiple
    return dim


# ----------------------------------------------------------------------------
# Tiled matmul kernel (qkv_proj and o_proj): bf16 operands, f32 accumulation
# ----------------------------------------------------------------------------
def matmul_kernel(a_ref, b_ref, o_ref, acc_ref):
    @pl.when(pl.program_id(2) == 0)
    def _init():
        acc_ref[...] = jnp.zeros_like(acc_ref)

    acc_ref[...] += jnp.dot(a_ref[...], b_ref[...],
                            preferred_element_type=jnp.float32)

    @pl.when(pl.program_id(2) == pl.num_programs(2) - 1)
    def _store():
        o_ref[...] = acc_ref[...].astype(o_ref.dtype)


def pallas_matmul(a, b, *, out_dtype=None, tm_target=512, tn_target=512,
                  tk_target=1024):
    M, K = a.shape
    K2, N = b.shape
    assert K == K2
    out_dtype = out_dtype if out_dtype is not None else a.dtype
    sub = 16 if a.dtype == jnp.bfloat16 else 8   # bf16 packs 16 rows / sublane tile
    tm = _pick_tile(M, tm_target, sub)
    tn = _pick_tile(N, tn_target, 128)
    tk = _pick_tile(K, tk_target, 128)
    grid = (M // tm, N // tn, K // tk)
    return pl.pallas_call(
        matmul_kernel,
        out_shape=jax.ShapeDtypeStruct((M, N), out_dtype),
        grid_spec=pltpu.PrefetchScalarGridSpec(
            num_scalar_prefetch=0,
            grid=grid,
            in_specs=[
                pl.BlockSpec((tm, tk), lambda i, j, k: (i, k)),
                pl.BlockSpec((tk, tn), lambda i, j, k: (k, j)),
            ],
            out_specs=pl.BlockSpec((tm, tn), lambda i, j, k: (i, j)),
            scratch_shapes=[pltpu.VMEM((tm, tn), jnp.float32)],
        ),
        compiler_params=pltpu.CompilerParams(
            dimension_semantics=("parallel", "parallel", "arbitrary")),
    )(a, b)


# ----------------------------------------------------------------------------
# RoPE pre-pass: rotate the Q and K heads of the fused qkv activation once.
# ----------------------------------------------------------------------------
def rope_kernel(x_ref, cos_ref, sin_ref, o_ref, *, head_dim, num_q_heads, scale):
    # x_ref    (1, t, D)  one (query or key) head slab, compute dtype (bf16)
    # cos/sin  (1, t, D)  f32 RoPE tables (rotate_half sign folded into sin)
    # o_ref    (1, t, D)  rotated head (query heads additionally pre-scaled)
    h = pl.program_id(2)
    half = head_dim // 2
    x = x_ref[0].astype(jnp.float32)                       # RoPE math in f32
    rolled = jnp.concatenate([x[:, half:], x[:, :half]], axis=-1)
    rot = x * cos_ref[0] + rolled * sin_ref[0]
    # fold the 1/sqrt(D) softmax scale into the query heads only
    s = jnp.where(h < num_q_heads, jnp.float32(scale), jnp.float32(1.0))
    o_ref[0] = (rot * s).astype(o_ref.dtype)


def pallas_rope(qkv, cos, sin_signed, *, num_heads, num_kv_heads, head_dim,
                scale, seq_tile=512):
    # qkv: (B, S, (H + 2*KV) * D); returns rot_qk: (B, S, (H + KV) * D)
    B, S, _ = qkv.shape
    H, KV, D = num_heads, num_kv_heads, head_dim
    t = _pick_tile(S, seq_tile, 16 if qkv.dtype == jnp.bfloat16 else 8)
    grid = (B, S // t, H + KV)          # head axis innermost: cos/sin DMA'd once per (b, si)
    kernel = functools.partial(rope_kernel, head_dim=D, num_q_heads=H, scale=scale)
    return pl.pallas_call(
        kernel,
        out_shape=jax.ShapeDtypeStruct((B, S, (H + KV) * D), qkv.dtype),
        grid_spec=pltpu.PrefetchScalarGridSpec(
            num_scalar_prefetch=0,
            grid=grid,
            in_specs=[
                pl.BlockSpec((1, t, D), lambda b, si, h: (b, si, h)),
                pl.BlockSpec((1, t, D), lambda b, si, h: (b, si, 0)),
                pl.BlockSpec((1, t, D), lambda b, si, h: (b, si, 0)),
            ],
            out_specs=pl.BlockSpec((1, t, D), lambda b, si, h: (b, si, h)),
        ),
        compiler_params=pltpu.CompilerParams(
            dimension_semantics=("parallel", "parallel", "parallel")),
    )(qkv, cos, sin_signed)


# ----------------------------------------------------------------------------
# Flash-style attention kernel: grid=(B, KV, Sq/t, Sk/t), GQA group per step
# ----------------------------------------------------------------------------
def flash_attention_kernel(q_ref, k_ref, v_ref, o_ref, m_ref, l_ref, acc_ref,
                           *, tq, tk, head_dim, n_rep):
    # q_ref  (1, tq, n_rep*D)  rotated+pre-scaled query heads of this KV group
    # k_ref  (1, tk, D)        rotated key head of this group (shared)
    # v_ref  (1, tk, D)        value head of this group (straight from qkv)
    # o_ref  (1, tq, n_rep*D)  output heads of this group (resident across ki)
    # m/l    (n_rep, tq, 1) f32, acc (n_rep, tq, D) f32  (VMEM scratch)
    qi = pl.program_id(2)
    ki = pl.program_id(3)
    D = head_dim

    @pl.when(ki == 0)
    def _init():
        m_ref[...] = jnp.full_like(m_ref, NEG_INF)
        l_ref[...] = jnp.zeros_like(l_ref)
        acc_ref[...] = jnp.zeros_like(acc_ref)

    def block_update(apply_mask):
        q = q_ref[0]                       # (tq, n_rep*D) bf16
        k = k_ref[0]                       # (tk, D)       bf16
        v = v_ref[0]                       # (tk, D)       bf16
        if apply_mask:
            row = qi * tq + lax.broadcasted_iota(jnp.int32, (tq, tk), 0)
            col = ki * tk + lax.broadcasted_iota(jnp.int32, (tq, tk), 1)
            keep = row >= col
        # static loop over the n_rep query heads of the group: the K/V tile
        # (and its DMA) is shared by all of them.
        for r in range(n_rep):
            q_r = q[:, r * D:(r + 1) * D]          # lane-aligned static slice
            s = lax.dot_general(q_r, k, (((1,), (1,)), ((), ())),
                                preferred_element_type=jnp.float32)  # (tq, tk)
            if apply_mask:
                s = jnp.where(keep, s, NEG_INF)
            m_prev = m_ref[r]                                     # (tq, 1)
            m_new = jnp.maximum(m_prev, jnp.max(s, axis=-1, keepdims=True))
            alpha = jnp.exp(m_prev - m_new)
            p = jnp.exp(s - m_new)
            l_ref[r] = alpha * l_ref[r] + jnp.sum(p, axis=-1, keepdims=True)
            acc_ref[r] = alpha * acc_ref[r] + jnp.dot(
                p.astype(v.dtype), v, preferred_element_type=jnp.float32)
            m_ref[r] = m_new

    # Fully-past block: no mask needed (saves the iota/compare/select VALU work).
    @pl.when(qi > ki)
    def _full():
        block_update(apply_mask=False)

    # Diagonal block: apply the causal mask built in-kernel.
    @pl.when(qi == ki)
    def _diag():
        block_update(apply_mask=True)

    # (Blocks with qi < ki are entirely in the causal future: no compute, and
    #  the k/v index maps clamp ki to qi so no DMA is issued for them either.)

    @pl.when(ki == pl.num_programs(3) - 1)
    def _finalize():
        inv = pl.reciprocal(l_ref[...], approx=True)      # EUP, ~free
        out = acc_ref[...] * inv                          # (n_rep, tq, D) f32
        o_ref[0] = jnp.concatenate(
            [out[r] for r in range(n_rep)], axis=-1).astype(o_ref.dtype)


def pallas_flash_attention(rot_qk, qkv, *, num_heads, num_kv_heads, head_dim,
                           seq_tile=512):
    # rot_qk: (B, S, (H + KV) * D)   rotated Q heads then rotated K heads
    # qkv:    (B, S, (H + 2*KV) * D) fused projection output (V read from here)
    B, S, _ = qkv.shape
    H, KV, D = num_heads, num_kv_heads, head_dim
    n_rep = H // KV
    t = _pick_tile(S, seq_tile, 16 if qkv.dtype == jnp.bfloat16 else 8)
    grid = (B, KV, S // t, S // t)
    kernel = functools.partial(flash_attention_kernel, tq=t, tk=t, head_dim=D,
                               n_rep=n_rep)
    # On v7x the combined parallel extent B*KV*(S/t) shards across both
    # TensorCores; ki (the reduction axis) stays "arbitrary".
    return pl.pallas_call(
        kernel,
        out_shape=jax.ShapeDtypeStruct((B, S, H * D), qkv.dtype),
        grid_spec=pltpu.PrefetchScalarGridSpec(
            num_scalar_prefetch=0,
            grid=grid,
            in_specs=[
                # Q: the n_rep query heads of group g (contiguous lanes).
                pl.BlockSpec((1, t, n_rep * D),
                             lambda b, g, qi, ki: (b, qi, g)),
                # K: shared key head of group g; ki clamped to qi so causally
                # skipped steps re-use the previous block (no wasted DMA).
                pl.BlockSpec((1, t, D),
                             lambda b, g, qi, ki: (b, jnp.minimum(ki, qi), H + g)),
                # V: shared value head of group g, straight from the fused qkv.
                pl.BlockSpec((1, t, D),
                             lambda b, g, qi, ki: (b, jnp.minimum(ki, qi),
                                                   H + KV + g)),
            ],
            out_specs=pl.BlockSpec((1, t, n_rep * D),
                                   lambda b, g, qi, ki: (b, qi, g)),
            scratch_shapes=[
                pltpu.VMEM((n_rep, t, 1), jnp.float32),   # m: running max
                pltpu.VMEM((n_rep, t, 1), jnp.float32),   # l: running denom
                pltpu.VMEM((n_rep, t, D), jnp.float32),   # acc: running numerator
            ],
        ),
        compiler_params=pltpu.CompilerParams(
            dimension_semantics=("parallel", "parallel", "parallel",
                                 "arbitrary")),
    )(rot_qk, rot_qk, qkv)


# ----------------------------------------------------------------------------
# Phi3Attention forward (Pallas-backed)
# ----------------------------------------------------------------------------
class Phi3AttentionPallas:
    """Pallas-TPU forward of Phi3Attention (inference path, no kv-cache)."""

    def __init__(self, hidden_size, num_heads, num_kv_heads,
                 rope_theta=10000.0, param_dtype=jnp.bfloat16, key=None):
        assert hidden_size % num_heads == 0
        assert num_heads % num_kv_heads == 0
        self.hidden_size = hidden_size
        self.num_heads = num_heads
        self.head_dim = hidden_size // num_heads
        self.num_key_value_heads = num_kv_heads
        self.num_key_value_groups = num_heads // num_kv_heads
        self.rope_theta = rope_theta
        self.param_dtype = param_dtype
        # TODO(synk): head_dim not a multiple of 128 (e.g. Phi3-mini's 96) needs
        # padded head lane-blocks; not implemented here.
        assert self.head_dim % 128 == 0

        op_size = num_heads * self.head_dim + 2 * (num_kv_heads * self.head_dim)
        k1, k2 = jax.random.split(key)
        # deterministic synthetic weights, stored (in, out) so forward is x @ W.
        # Stored in bf16 so the MXU sees native-rate bf16 operands (accumulation
        # stays f32 inside the kernels).
        self.w_qkv = (jax.random.normal(k1, (hidden_size, op_size), jnp.float32)
                      * (1.0 / math.sqrt(hidden_size))).astype(param_dtype)
        self.w_o = (jax.random.normal(
            k2, (num_heads * self.head_dim, hidden_size), jnp.float32)
            * (1.0 / math.sqrt(hidden_size))).astype(param_dtype)

    def _rotary_f32(self, position_ids):
        # position_ids: (B, S) int -> cos/sin (B, S, D) float32 (kept f32: casting
        # the tables to bf16 loses accuracy at large positions).
        D = self.head_dim
        inv_freq = 1.0 / (self.rope_theta **
                          (jnp.arange(0, D, 2, dtype=jnp.float32) / D))
        freqs = (position_ids.astype(jnp.float32)[:, :, None]
                 * inv_freq[None, None, :])
        emb = jnp.concatenate([freqs, freqs], axis=-1)
        return jnp.cos(emb), jnp.sin(emb)

    def __call__(self, hidden_states, attention_mask, position_ids):
        # TODO(synk): arbitrary additive attention_mask (padding), kv-cache and
        # attention_dropout are not wired into the kernel; only the module's
        # is_causal=True mask is supported (built in-kernel).
        del attention_mask
        B, S, _ = hidden_states.shape
        H, KV, D = self.num_heads, self.num_key_value_heads, self.head_dim
        cdt = self.param_dtype  # bf16 compute (matmul operand) dtype

        # fused qkv projection; keep the fused (B, S, (H+2KV)*D) layout — the
        # RoPE and attention kernels index heads straight out of it.
        x2d = hidden_states.reshape(B * S, self.hidden_size).astype(cdt)
        qkv = pallas_matmul(x2d, self.w_qkv, out_dtype=cdt).reshape(B, S, -1)

        # RoPE tables in f32, rotate_half sign pre-folded into sin.
        cos, sin = self._rotary_f32(position_ids)
        half = D // 2
        sign = jnp.where(jnp.arange(D) < half, -1.0, 1.0).astype(jnp.float32)
        sin_signed = sin * sign

        # Rotate Q and K once (Q also pre-scaled by 1/sqrt(D)); V stays in qkv.
        rot_qk = pallas_rope(qkv, cos, sin_signed, num_heads=H,
                             num_kv_heads=KV, head_dim=D,
                             scale=1.0 / math.sqrt(D))

        attn = pallas_flash_attention(rot_qk, qkv, num_heads=H,
                                      num_kv_heads=KV, head_dim=D)  # (B,S,H*D)

        out = pallas_matmul(attn.reshape(B * S, H * D), self.w_o,
                            out_dtype=jnp.float32)
        return out.reshape(B, S, self.hidden_size)


# ----------------------------------------------------------------------------
# Pure-JAX reference (mirrors the PyTorch forward, emulating the kernel's
# bf16-operand / f32-accumulation precision) for the correctness check
# ----------------------------------------------------------------------------
def reference_forward(mod, hidden_states, attention_mask, position_ids):
    prec = lax.Precision.HIGHEST
    B, S, _ = hidden_states.shape
    H, KV, D = mod.num_heads, mod.num_key_value_heads, mod.head_dim
    cdt = mod.param_dtype

    def rnd(x):  # emulate the kernel's operand rounding
        return x.astype(cdt).astype(jnp.float32)

    x = rnd(hidden_states)
    w_qkv = mod.w_qkv.astype(jnp.float32)
    w_o = mod.w_o.astype(jnp.float32)
    qkv = rnd(jnp.einsum("bsh,ho->bso", x, w_qkv, precision=prec))
    q_pos = H * D
    q = qkv[..., :q_pos].reshape(B, S, H, D).transpose(0, 2, 1, 3)
    k = qkv[..., q_pos:q_pos + KV * D].reshape(B, S, KV, D).transpose(0, 2, 1, 3)
    v = qkv[..., q_pos + KV * D:].reshape(B, S, KV, D).transpose(0, 2, 1, 3)
    cos, sin = mod._rotary_f32(position_ids)
    cos = cos[:, None]
    sin = sin[:, None]

    def rot_half(t):
        return jnp.concatenate([-t[..., D // 2:], t[..., :D // 2]], axis=-1)

    q = rnd(q * cos + rot_half(q) * sin)
    k = rnd(k * cos + rot_half(k) * sin)
    n_rep = mod.num_key_value_groups
    k = jnp.repeat(k, n_rep, axis=1)
    v = jnp.repeat(v, n_rep, axis=1)
    scores = jnp.einsum("bhqd,bhkd->bhqk", q, k, precision=prec) / math.sqrt(D)
    scores = scores + attention_mask
    w = rnd(jax.nn.softmax(scores.astype(jnp.float32), axis=-1))
    out = rnd(jnp.einsum("bhqk,bhkd->bhqd", w, v, precision=prec))
    out = out.transpose(0, 2, 1, 3).reshape(B, S, H * D)
    return jnp.einsum("bsd,dh->bsh", out, w_o, precision=prec)


# ----------------------------------------------------------------------------
if __name__ == "__main__":
    key = jax.random.PRNGKey(0)
    k_w, k_x = jax.random.split(key)

    # small config: hidden=512, heads=4 (head_dim=128), kv_heads=2, batch=2, seq=8
    B, S = 2, 8
    hidden_size, num_heads, num_kv_heads = 512, 4, 2

    mod = Phi3AttentionPallas(hidden_size, num_heads, num_kv_heads,
                              rope_theta=10000.0, param_dtype=jnp.bfloat16,
                              key=k_w)

    hidden_states = jax.random.normal(k_x, (B, S, hidden_size), jnp.float32)
    position_ids = jnp.broadcast_to(
        jnp.arange(S, dtype=jnp.int32)[None, :], (B, S))

    # causal additive mask (used by the reference; the kernel builds it in-kernel)
    causal = jnp.tril(jnp.ones((S, S), dtype=bool))
    attention_mask = jnp.where(causal, 0.0, jnp.finfo(jnp.float32).min)
    attention_mask = jnp.broadcast_to(
        attention_mask[None, None], (B, 1, S, S)).astype(jnp.float32)

    out = jax.block_until_ready(mod(hidden_states, attention_mask, position_ids))
    ref = reference_forward(mod, hidden_states, attention_mask, position_ids)

    assert out.shape == (B, S, hidden_size)
    max_err = float(jnp.max(jnp.abs(out - ref)))
    assert bool(jnp.allclose(out, ref, rtol=2e-2, atol=2e-2)), (
        f"mismatch vs reference (max abs err {max_err})")

    print("KERNEL_OK")
</pallas_src>

<mosaic_0001>
module attributes {stable_mosaic.version = 11 : i64} {
  func.func @matmul_kernel(%arg0: i32, %arg1: i32, %arg2: i32, %arg3: memref<16x512xbf16, #tpu.memory_space<vmem>>, %arg4: memref<512x512xbf16, #tpu.memory_space<vmem>>, %arg5: memref<16x512xbf16, #tpu.memory_space<vmem>>, %arg6: memref<16x512xf32, #tpu.memory_space<vmem>>) attributes {dimension_semantics = [#tpu.dimension_semantics<parallel>, #tpu.dimension_semantics<parallel>, #tpu.dimension_semantics<arbitrary>], iteration_bounds = array<i64: 1, 2, 1>, scalar_prefetch = 0 : i64, scratch_operands = 1 : i64, tpu.core_type = #tpu.core_type<tc>, window_params = [{transform_indices = @transform_0, window_bounds = array<i64: 16, 512>}, {transform_indices = @transform_1, window_bounds = array<i64: 512, 512>}, {transform_indices = @transform_2, window_bounds = array<i64: 16, 512>}]} {
    %c0_i32 = arith.constant 0 : i32
    %0 = arith.cmpi eq, %arg2, %c0_i32 : i32
    %1 = arith.extui %0 : i1 to i32
    %c0_i32_0 = arith.constant 0 : i32
    %2 = arith.cmpi ne, %1, %c0_i32_0 : i32
    scf.if %2 {
      %cst_10 = arith.constant 0.000000e+00 : f32
      %12 = vector.broadcast %cst_10 : f32 to vector<16x512xf32>
      %c0_11 = arith.constant 0 : index
      %c0_12 = arith.constant 0 : index
      %13 = vector.load %arg6[%c0_11, %c0_12] : memref<16x512xf32, #tpu.memory_space<vmem>>, vector<16x512xf32>
      tpu.vector_store %arg6[%c0_11, %c0_12], %12 {strides = array<i32>} : memref<16x512xf32, #tpu.memory_space<vmem>>, vector<16x512xf32>,
    } else {
    }
    %c0 = arith.constant 0 : index
    %c0_1 = arith.constant 0 : index
    %3 = vector.load %arg6[%c0, %c0_1] : memref<16x512xf32, #tpu.memory_space<vmem>>, vector<16x512xf32>
    %c0_2 = arith.constant 0 : index
    %c0_3 = arith.constant 0 : index
    %4 = vector.load %arg3[%c0_2, %c0_3] : memref<16x512xbf16, #tpu.memory_space<vmem>>, vector<16x512xbf16>
    %c0_4 = arith.constant 0 : index
    %c0_5 = arith.constant 0 : index
    %5 = vector.load %arg4[%c0_4, %c0_5] : memref<512x512xbf16, #tpu.memory_space<vmem>>, vector<512x512xbf16>
    %cst = arith.constant dense<0.000000e+00> : vector<16x512xf32>
    %6 = tpu.matmul %4, %5, %cst {dimension_numbers = #tpu.dot_dimension_numbers<[1], [0], [0], [1], [0, 0, 1, 1], [], []>} : vector<16x512xbf16>, vector<512x512xbf16>, vector<16x512xf32> -> vector<16x512xf32>
    %7 = arith.addf %3, %6 : vector<16x512xf32>
    %c0_6 = arith.constant 0 : index
    %c0_7 = arith.constant 0 : index
    %8 = vector.load %arg6[%c0_6, %c0_7] : memref<16x512xf32, #tpu.memory_space<vmem>>, vector<16x512xf32>
    tpu.vector_store %arg6[%c0_6, %c0_7], %7 {strides = array<i32>} : memref<16x512xf32, #tpu.memory_space<vmem>>, vector<16x512xf32>,
    %c0_i32_8 = arith.constant 0 : i32
    %9 = arith.cmpi eq, %arg2, %c0_i32_8 : i32
    %10 = arith.extui %9 : i1 to i32
    %c0_i32_9 = arith.constant 0 : i32
    %11 = arith.cmpi ne, %10, %c0_i32_9 : i32
    scf.if %11 {
      %c0_10 = arith.constant 0 : index
      %c0_11 = arith.constant 0 : index
      %12 = vector.load %arg6[%c0_10, %c0_11] : memref<16x512xf32, #tpu.memory_space<vmem>>, vector<16x512xf32>
      %13 = arith.truncf %12 : vector<16x512xf32> to vector<16x512xbf16>
      %c0_12 = arith.constant 0 : index
      %c0_13 = arith.constant 0 : index
      %14 = vector.load %arg5[%c0_12, %c0_13] : memref<16x512xbf16, #tpu.memory_space<vmem>>, vector<16x512xbf16>
      tpu.vector_store %arg5[%c0_12, %c0_13], %13 {strides = array<i32>} : memref<16x512xbf16, #tpu.memory_space<vmem>>, vector<16x512xbf16>,
    } else {
    }
    return
  }
  func.func @transform_0(%arg0: i32, %arg1: i32, %arg2: i32) -> (i32, i32) {
    %c0_i32 = arith.constant 0 : i32
    return %arg0, %arg2 : i32, i32
  }
  func.func @transform_1(%arg0: i32, %arg1: i32, %arg2: i32) -> (i32, i32) {
    %c0_i32 = arith.constant 0 : i32
    return %arg2, %arg1 : i32, i32
  }
  func.func @transform_2(%arg0: i32, %arg1: i32, %arg2: i32) -> (i32, i32) {
    %c0_i32 = arith.constant 0 : i32
    return %arg0, %arg1 : i32, i32
  }
}

</mosaic_0001>

<bundles_post_ra>
// kernel: tpu_custom_call.1
= control target key start
LH: loop header
LB: loop body
LE: loop exit
PB: predicated region body
PF: predicated region fallthrough
CT: control target
= control target key end

     0   :  { %7 = vsyncpa [#allocation4], 0  ;;  %s2304_s0 = inlined_call_operand.hbm [shape: bf16[16,512], index: 0, kind: input, shape index: {}]   ;;  %s2305_s1 = inlined_call_operand.hbm [shape: bf16[512,1024], index: 1, kind: input, shape index: {}]   ;;  %s2306_s2 = inlined_call_operand.hbm [shape: bf16[16,1024], index: 2, kind: output, shape index: {}]  }
   0x1   :  { %8 = vsyncpa [#allocation7], 0 }
   0x2   :  { %10 = vsyncpa [#allocation7 + $0x1], 0 }
   0x3   :  { %11 = vsyncpa [#allocation5], 0 }
   0x4   :  { %13 = vsyncpa [#allocation5 + $0x1], 0  ;;  %s1985_s9 = smov 0   ;;  %s1987_s10 = smov 0  }
   0x5   :  { %s1989_s11 = smov 0   ;;  %s1991_s12 = smov 0  }
   0x6   :  { %s1993_s13 = smov 0   ;;  %s1995_s14 = smov 0  }
   0x7 LB: > { %2312 = sst [smem:[#allocation12_spill]] %s1959_s14  ;;  %s1385_s15 = sadd.s32 4294967295, %s1959_s14   ;;  %s1959_s14 = sphi %s1995_s14, %s2332_s14   ;;  %s1955_s13 = sphi %s1993_s13, %s2331_s13   ;;  %s1951_s12 = sphi %s1991_s12, %s2330_s12   ;;  %s1947_s11 = sphi %s1989_s11, %s2329_s11   ;;  %s1943_s10 = sphi %s1987_s10, %s2328_s10   ;;  %s1939_s9 = sphi %s1985_s9, %s2327_s9  }
   0x8   : > { %s1386_s16 = sadd.s32 4294967294, %s1959_s14   ;;  %p82_p0 = scmp.ne.s32.totalorder %s1947_s11, %s1943_s10 }
   0x9   : > { %p83_p1 = scmp.eq.s32.totalorder %s1959_s14, 0  ;;  %p88_p2 = scmp.ne.s32.totalorder %s1943_s10, %s1939_s9 }
   0xa   : > { %p2022_p3 = scmp.eq.s32.totalorder %s1385_s15, 0  ;;  %p114_p5 = scmp.eq.s32.totalorder %s1385_s15, 1 }
   0xb   : > { %p2026_p4 = por %p83_p1, %p82_p0  ;;  %p120_p7 = scmp.eq.s32.totalorder %s1386_s16, 1 }
   0xc   : > { %p2032_p6 = por %p2022_p3, %p88_p2  ;;  %p2036_p8 = por %p114_p5, %p82_p0 }
   0xd   : > { %p1387_p9 = scmp.ge.s32.totalorder %s1959_s14, 1  ;;  %p2041_p10 = por %p120_p7, %p88_p2 }
   0xe   : > { %s2315_s19 = scalar_select %p2032_p6, 1, 0 }
   0xf   : > { %s2316_s20 = scalar_select %p2036_p8, 1, 0 }
  0x10   : > { %s2317_s21 = scalar_select %p2041_p10, 1, 0 }
  0x11   : > { %p127_p11 = scmp.lt.s32.totalorder %s1959_s14, 3  ;;  %s1961_s23 = smov [#allocation3]  }
  0x12   : > { %s145_s24 = sshll.u32 %s1961_s23, 4  ;;  %p1565_p1 = scmp.lt.s32.totalorder %s1959_s14, 2  ;;  %s146_s24 = int_to_ptr.vmem [resolvable:$true] %s145_s24 }
  0x13   : > { %p2046_p12 = pnand %p1387_p9, %p127_p11  ;;  %s34_s27 = sadd.s32 1, %s1955_s13 }
  0x14   : > { %p2062_p2 = pnand %p1565_p1, %p2026_p4  ;;  %s1832_s28 = scalar_lea.vmem %s146_s24, 512 }
  0x15   : > { %p1552_p13 = pneg %p2046_p12  ;;  %p1833_p9 = scmp.ne.s32.totalorder %s146_s24, %s1832_s28 }
  0x16   : > { %p1840_p0 = scmp.lt.s32.totalorder %s146_s24, %s146_s24  ;;  %p1841_p8 = scmp.lt.s32.totalorder %s1832_s28, %s1832_s28 }
  0x17   : > { %p2056_p5 = pnand %p1552_p13, %p2022_p3 }
  0x18   : > { %p1842_p6 = por %p1841_p8, %p1840_p0 }
  0x19   : > { %p1823_p7 = pneg %p2056_p5 }
  0x1b   : > { %p1835_p11 = pnand %p1833_p9, %p1823_p7 }
  0x1d   : > { %p1836_p10 = pneg %p1835_p11 }
  0x1f   : > { %p1843_p13 = pnand %p1842_p6, %p1836_p10 }
  0x21   : > { %1846 = shalt.err (!%p1843_p13)
}
  0x22   : > { %s2311_s29 = smov 256   ;;  %s1963_s30 = smov 16  }
  0x23   : > { %1555 = dma.hbm_to_vmem [thread:$0]  (!%p2056_p5), %s2304_s0, 512, %s146_s24, [#allocation4], %s2311_s29, %s2311_s29, %s1963_s30  }
  0x24   : > { %p36_p4 = scmp.ge.s32.totalorder %s34_s27, 2  ;;  %s75_s5 = sadd.s32 1, %s1947_s11 }
  0x25   : > { %s159_s6 = sand.u32 1, %s1947_s11   ;;  %s1538_s15 = sshll.u32 %s1955_s13, 8 }
  0x26   : > { %s2334_s27 = smov (%p36_p4, %s34_s27), 0  ;;  %s1390_s7 = sshll.u32 %s159_s6, 10 }
  0x27   : > { %s71_s8 = ssub.s32 %s1955_s13, %s2334_s27  ;;  %s172_s23 = scalar_lea.hbm %s2305_s1, %s1538_s15 }
  0x28   : > { %p73_p6 = scmp.eq.s32.totalorder %s71_s8, 0  ;;  %s163_s25 = scalar_lea.vmem [#allocation6], %s1390_s7 }
  0x29   : > { %s173_s28 = sshll.u32 %s163_s25, 4  ;;  %s160_s24 = scalar_lea.sflag [#allocation7], %s159_s6  ;;  %s174_s28 = int_to_ptr.vmem [resolvable:$true] %s173_s28 }
  0x2a   : > { %s2088_s14 = scalar_select %p73_p6, %s1947_s11, %s75_s5  }
  0x2b   : > { %p1849_p8 = pneg %p2062_p2  ;;  %s1860_s3 = scalar_lea.vmem %s174_s28, 16384 }
  0x2c   : > { %p1861_p10 = scmp.ne.s32.totalorder %s174_s28, %s1860_s3  ;;  %s1964_s4 = smov [#allocation6]  }
  0x2d   : > { %s1865_s29 = sshll.u32 %s1964_s4, 4  ;;  %s1866_s29 = int_to_ptr.vmem [resolvable:$false] %s1865_s29 }
  0x2e   : > { %p1863_p0 = pnand %p1861_p10, %p1849_p8  ;;  %s1867_s8 = scalar_lea.vmem %s1866_s29, 32768 }
  0x2f   : > { %p1868_p5 = scmp.lt.s32.totalorder %s174_s28, %s1866_s29  ;;  %p1869_p7 = scmp.lt.s32.totalorder %s1867_s8, %s1860_s3 }
  0x30   : > { %p1864_p1 = pneg %p1863_p0 }
  0x31   : > { %p1870_p9 = por %p1869_p7, %p1868_p5 }
  0x33   : > { %p1871_p11 = pnand %p1870_p9, %p1864_p1 }
  0x35   : > { %1874 = shalt.err (!%p1871_p11)
}
  0x36   : > { %s1965_s7 = smov 512   ;;  %s2321_s5 = smov 256  }
  0x37   : > { %1559 = dma.hbm_to_vmem [thread:$0]  (!%p2062_p2), %s172_s23, 16384, %s174_s28, %s160_s24, %s1965_s7, %s2321_s5, %s1963_s30  }
  0x38   : > { %185 = sbr.rel (%p2046_p12) target bundleno = 414 (0x19e), region = 28 }
  0x3d   : > { %1926 = dma.done.wait (%p2022_p3), [#allocation4], 512  }
  0x3e   : > { %1928 = vsyncadd (%p2022_p3), [#allocation4], 4294966784  ;;  %s2103_s29 = sand.u32 1, %s1943_s10   ;;  %p2322_p2 = scmp.ne.s32.totalorder %s2315_s19, 0 }
  0x3f   : > { %s1395_s6 = sshll.u32 %s2103_s29, 10  ;;  %s192_s26 = scalar_lea.sflag [#allocation7], %s2103_s29 }
  0x40   : > { %s2107_s15 = scalar_lea.vmem [#allocation6], %s1395_s6 }
  0x41   : > { %1930 = dma.done.wait (%p2322_p2), %s192_s26, 16384  }
  0x42   : > { %1932 = vsyncadd (%p2322_p2), %s192_s26, 4294950912  ;;  %v1623_v0 = vld [vmem:[%s2107_s15 + $0xe4] ss:$16 sps:$4 sm:$0xff]   ;;  %v1627_v2 = vld [vmem:[%s2107_s15 + $0xe0] ss:$16 sps:$4 sm:$0xff]   ;;  %s1396_s17 = sshll.u32 %s2103_s29, 5 }
  0x43   : > { %v1625_v1 = vld [vmem:[%s2107_s15 + $0x2e4] ss:$16 sps:$4 sm:$0xff]   ;;  %1034 = vmatprep.subr.bf16.mxu0 %v1623_v0  ;;  %v1628_v3 = vld [vmem:[%s2107_s15 + $0x2e0] ss:$16 sps:$4 sm:$0xff]   ;;  %v1724_v51 = vld [vmem:[#allocation3 + $0xc] ss:$16 sps:$4 sm:$0xff]  }
  0x44   : > { %1077 = vmatprep.subr.bf16.mxu1 %v1625_v1  ;;  %v1629_v4 = vld [vmem:[%s2107_s15 + $0xc4] ss:$16 sps:$4 sm:$0xff]   ;;  %1035 = vmatpush1.bf16.msra.mxu0 %v1627_v2  ;;  %v1633_v6 = vld [vmem:[%s2107_s15 + $0xc0] ss:$16 sps:$4 sm:$0xff]   ;;  %v1727_v2 = vld [vmem:[%s2107_s15 + $0xec] ss:$16 sps:$4 sm:$0xff]  }
  0x45   : > { %1078 = vmatpush1.bf16.msra.mxu1 %v1628_v3  ;;  %v1631_v5 = vld [vmem:[%s2107_s15 + $0x2c4] ss:$16 sps:$4 sm:$0xff]   ;;  %1036 = vmatprep.subr.bf16.mxu0 %v1629_v4  ;;  %v1634_v7 = vld [vmem:[%s2107_s15 + $0x2c0] ss:$16 sps:$4 sm:$0xff]   ;;  %v1730_v3 = vld [vmem:[%s2107_s15 + $0x2ec] ss:$16 sps:$4 sm:$0xff]  }
  0x46   : > { %1079 = vmatprep.subr.bf16.mxu1 %v1631_v5  ;;  %v1635_v8 = vld [vmem:[%s2107_s15 + $0xa4] ss:$16 sps:$4 sm:$0xff]   ;;  %v1639_v10 = vld [vmem:[%s2107_s15 + $0xa0] ss:$16 sps:$4 sm:$0xff]   ;;  %1109 = vmatprep.mubr.bf16.mxu1 %v1724_v51  ;;  %v2181_v5 = vld [vmem:[#allocation3 + $0x8] ss:$16 sps:$4 sm:$0xff]  }
  0x47   : > { %v1637_v9 = vld [vmem:[%s2107_s15 + $0x2a4] ss:$16 sps:$4 sm:$0xff]   ;;  %v1640_v11 = vld [vmem:[%s2107_s15 + $0x2a0] ss:$16 sps:$4 sm:$0xff]   ;;  %s215_s19 = scalar_lea.vmem [#allocation8], %s1396_s17  ;;  %s1543_s30 = sshll.u32 %s1951_s12, 8 }
  0x48   : > { %1037 = vmatpush1.bf16.msra.mxu0 %v1633_v6  ;;  %v1641_v12 = vld [vmem:[%s2107_s15 + $0x84] ss:$16 sps:$4 sm:$0xff]   ;;  %v1645_v14 = vld [vmem:[%s2107_s15 + $0x80] ss:$16 sps:$4 sm:$0xff]   ;;  %v1725_v6 = vld [vmem:[%s2107_s15 + $0xe8] ss:$16 sps:$4 sm:$0xff]   ;;  %s2256_s23 = scalar_lea.hbm %s2306_s2, %s1543_s30 }
  0x49   : > { %1080 = vmatpush1.bf16.msra.mxu1 %v1634_v7  ;;  %1038 = vmatprep.subr.bf16.mxu0 %v1635_v8  ;;  %v1643_v13 = vld [vmem:[%s2107_s15 + $0x284] ss:$16 sps:$4 sm:$0xff]   ;;  %v1646_v15 = vld [vmem:[%s2107_s15 + $0x280] ss:$16 sps:$4 sm:$0xff]   ;;  %v1728_v7 = vld [vmem:[%s2107_s15 + $0x2e8] ss:$16 sps:$4 sm:$0xff]  }
  0x4a   : > { %1081 = vmatprep.subr.bf16.mxu1 %v1637_v9  ;;  %v1647_v16 = vld [vmem:[%s2107_s15 + $0x64] ss:$16 sps:$4 sm:$0xff]   ;;  %v1651_v18 = vld [vmem:[%s2107_s15 + $0x60] ss:$16 sps:$4 sm:$0xff]   ;;  %v1733_v8 = vld [vmem:[%s2107_s15 + $0xcc] ss:$16 sps:$4 sm:$0xff]  }
  0x4b   : > { %v1649_v17 = vld [vmem:[%s2107_s15 + $0x264] ss:$16 sps:$4 sm:$0xff]   ;;  %v1652_v19 = vld [vmem:[%s2107_s15 + $0x260] ss:$16 sps:$4 sm:$0xff]   ;;  %v1736_v9 = vld [vmem:[%s2107_s15 + $0x2cc] ss:$16 sps:$4 sm:$0xff]  }
  0x4c   : > { %1039 = vmatpush1.bf16.msra.mxu0 %v1639_v10  ;;  %v1653_v20 = vld [vmem:[%s2107_s15 + $0x44] ss:$16 sps:$4 sm:$0xff]   ;;  %v1657_v22 = vld [vmem:[%s2107_s15 + $0x40] ss:$16 sps:$4 sm:$0xff]   ;;  %v1731_v10 = vld [vmem:[%s2107_s15 + $0xc8] ss:$16 sps:$4 sm:$0xff]  }
  0x4d   : > { %1082 = vmatpush1.bf16.msra.mxu1 %v1640_v11  ;;  %1040 = vmatprep.subr.bf16.mxu0 %v1641_v12  ;;  %v1655_v21 = vld [vmem:[%s2107_s15 + $0x244] ss:$16 sps:$4 sm:$0xff]   ;;  %v1658_v23 = vld [vmem:[%s2107_s15 + $0x240] ss:$16 sps:$4 sm:$0xff]   ;;  %v1734_v11 = vld [vmem:[%s2107_s15 + $0x2c8] ss:$16 sps:$4 sm:$0xff]  }
  0x4e   : > { %1083 = vmatprep.subr.bf16.mxu1 %v1643_v13  ;;  %v1659_v24 = vld [vmem:[%s2107_s15 + $0x24] ss:$16 sps:$4 sm:$0xff]   ;;  %v1663_v26 = vld [vmem:[%s2107_s15 + $0x20] ss:$16 sps:$4 sm:$0xff]   ;;  %v1739_v12 = vld [vmem:[%s2107_s15 + $0xac] ss:$16 sps:$4 sm:$0xff]  }
  0x4f   : > { %v1661_v25 = vld [vmem:[%s2107_s15 + $0x224] ss:$16 sps:$4 sm:$0xff]   ;;  %v1664_v27 = vld [vmem:[%s2107_s15 + $0x220] ss:$16 sps:$4 sm:$0xff]   ;;  %v1742_v13 = vld [vmem:[%s2107_s15 + $0x2ac] ss:$16 sps:$4 sm:$0xff]  }
  0x50   : > { %1041 = vmatpush1.bf16.msra.mxu0 %v1645_v14  ;;  %v1665_v28 = vld [vmem:[%s2107_s15 + $0x4] ss:$16 sps:$4 sm:$0xff]   ;;  %v1669_v30 = vld [vmem:[%s2107_s15] ss:$16 sps:$4 sm:$0xff]   ;;  %v1737_v14 = vld [vmem:[%s2107_s15 + $0xa8] ss:$16 sps:$4 sm:$0xff]  }
  0x51   : > { %1084 = vmatpush1.bf16.msra.mxu1 %v1646_v15  ;;  %1042 = vmatprep.subr.bf16.mxu0 %v1647_v16  ;;  %v1667_v29 = vld [vmem:[%s2107_s15 + $0x204] ss:$16 sps:$4 sm:$0xff]   ;;  %v1670_v31 = vld [vmem:[%s2107_s15 + $0x200] ss:$16 sps:$4 sm:$0xff]   ;;  %v1740_v15 = vld [vmem:[%s2107_s15 + $0x2a8] ss:$16 sps:$4 sm:$0xff]  }
  0x52   : > { %1085 = vmatprep.subr.bf16.mxu1 %v1649_v17  ;;  %v1671_v32 = vld [vmem:[%s2107_s15 + $0x1e4] ss:$16 sps:$4 sm:$0xff]   ;;  %v1675_v34 = vld [vmem:[%s2107_s15 + $0x1e0] ss:$16 sps:$4 sm:$0xff]   ;;  %v1745_v16 = vld [vmem:[%s2107_s15 + $0x8c] ss:$16 sps:$4 sm:$0xff]  }
  0x53   : > { %v1673_v33 = vld [vmem:[%s2107_s15 + $0x3e4] ss:$16 sps:$4 sm:$0xff]   ;;  %v1676_v35 = vld [vmem:[%s2107_s15 + $0x3e0] ss:$16 sps:$4 sm:$0xff]   ;;  %v1748_v17 = vld [vmem:[%s2107_s15 + $0x28c] ss:$16 sps:$4 sm:$0xff]  }
  0x54   : > { %1043 = vmatpush1.bf16.msra.mxu0 %v1651_v18  ;;  %v1677_v36 = vld [vmem:[%s2107_s15 + $0x1c4] ss:$16 sps:$4 sm:$0xff]   ;;  %v1681_v38 = vld [vmem:[%s2107_s15 + $0x1c0] ss:$16 sps:$4 sm:$0xff]   ;;  %v1743_v18 = vld [vmem:[%s2107_s15 + $0x88] ss:$16 sps:$4 sm:$0xff]  }
  0x55   : > { %1086 = vmatpush1.bf16.msra.mxu1 %v1652_v19  ;;  %1044 = vmatprep.subr.bf16.mxu0 %v1653_v20  ;;  %v1679_v37 = vld [vmem:[%s2107_s15 + $0x3c4] ss:$16 sps:$4 sm:$0xff]   ;;  %v1682_v39 = vld [vmem:[%s2107_s15 + $0x3c0] ss:$16 sps:$4 sm:$0xff]   ;;  %v1746_v19 = vld [vmem:[%s2107_s15 + $0x288] ss:$16 sps:$4 sm:$0xff]  }
  0x56   : > { %1087 = vmatprep.subr.bf16.mxu1 %v1655_v21  ;;  %v1683_v40 = vld [vmem:[%s2107_s15 + $0x1a4] ss:$16 sps:$4 sm:$0xff]   ;;  %v1687_v42 = vld [vmem:[%s2107_s15 + $0x1a0] ss:$16 sps:$4 sm:$0xff]   ;;  %v1751_v20 = vld [vmem:[%s2107_s15 + $0x6c] ss:$16 sps:$4 sm:$0xff]  }
  0x57   : > { %v1685_v41 = vld [vmem:[%s2107_s15 + $0x3a4] ss:$16 sps:$4 sm:$0xff]   ;;  %v1688_v43 = vld [vmem:[%s2107_s15 + $0x3a0] ss:$16 sps:$4 sm:$0xff]   ;;  %v1754_v21 = vld [vmem:[%s2107_s15 + $0x26c] ss:$16 sps:$4 sm:$0xff]  }
  0x58   : > { %1045 = vmatpush1.bf16.msra.mxu0 %v1657_v22  ;;  %v1689_v44 = vld [vmem:[%s2107_s15 + $0x184] ss:$16 sps:$4 sm:$0xff]   ;;  %v1693_v46 = vld [vmem:[%s2107_s15 + $0x180] ss:$16 sps:$4 sm:$0xff]   ;;  %v1749_v22 = vld [vmem:[%s2107_s15 + $0x68] ss:$16 sps:$4 sm:$0xff]  }
  0x59   : > { %1088 = vmatpush1.bf16.msra.mxu1 %v1658_v23  ;;  %1046 = vmatprep.subr.bf16.mxu0 %v1659_v24  ;;  %v1691_v45 = vld [vmem:[%s2107_s15 + $0x384] ss:$16 sps:$4 sm:$0xff]   ;;  %v1694_v47 = vld [vmem:[%s2107_s15 + $0x380] ss:$16 sps:$4 sm:$0xff]   ;;  %v1752_v23 = vld [vmem:[%s2107_s15 + $0x268] ss:$16 sps:$4 sm:$0xff]  }
  0x5a   : > { %1089 = vmatprep.subr.bf16.mxu1 %v1661_v25  ;;  %v1695_v48 = vld [vmem:[%s2107_s15 + $0x164] ss:$16 sps:$4 sm:$0xff]   ;;  %v1699_v52 = vld [vmem:[%s2107_s15 + $0x160] ss:$16 sps:$4 sm:$0xff]   ;;  %v1757_v24 = vld [vmem:[%s2107_s15 + $0x4c] ss:$16 sps:$4 sm:$0xff]  }
  0x5b   : > { %v1721_v49 = vld [vmem:[#allocation3 + $0x4] ss:$16 sps:$4 sm:$0xff]   ;;  %v1700_v53 = vld [vmem:[%s2107_s15 + $0x360] ss:$16 sps:$4 sm:$0xff]   ;;  %v1760_v25 = vld [vmem:[%s2107_s15 + $0x24c] ss:$16 sps:$4 sm:$0xff]  }
  0x5c   : > { %1047 = vmatpush1.bf16.msra.mxu0 %v1663_v26  ;;  %v1697_v50 = vld [vmem:[%s2107_s15 + $0x364] ss:$16 sps:$4 sm:$0xff]   ;;  %1066 = vmatprep.mubr.bf16.mxu0 %v1721_v49  ;;  %v1705_v56 = vld [vmem:[%s2107_s15 + $0x140] ss:$16 sps:$4 sm:$0xff]   ;;  %v1755_v26 = vld [vmem:[%s2107_s15 + $0x48] ss:$16 sps:$4 sm:$0xff]  }
  0x5d   : > { %1090 = vmatpush1.bf16.msra.mxu1 %v1664_v27  ;;  %1048 = vmatprep.subr.bf16.mxu0 %v1665_v28  ;;  %v1701_v54 = vld [vmem:[%s2107_s15 + $0x144] ss:$16 sps:$4 sm:$0xff]   ;;  %v1706_v57 = vld [vmem:[%s2107_s15 + $0x340] ss:$16 sps:$4 sm:$0xff]   ;;  %v1758_v27 = vld [vmem:[%s2107_s15 + $0x248] ss:$16 sps:$4 sm:$0xff]  }
  0x5e   : > { %1091 = vmatprep.subr.bf16.mxu1 %v1667_v29  ;;  %v1703_v55 = vld [vmem:[%s2107_s15 + $0x344] ss:$16 sps:$4 sm:$0xff]   ;;  %v1711_v60 = vld [vmem:[%s2107_s15 + $0x120] ss:$16 sps:$4 sm:$0xff]   ;;  %v1763_v28 = vld [vmem:[%s2107_s15 + $0x2c] ss:$16 sps:$4 sm:$0xff]  }
  0x5f   : > { %v1707_v58 = vld [vmem:[%s2107_s15 + $0x124] ss:$16 sps:$4 sm:$0xff]   ;;  %v1712_v61 = vld [vmem:[%s2107_s15 + $0x320] ss:$16 sps:$4 sm:$0xff]   ;;  %v1766_v29 = vld [vmem:[%s2107_s15 + $0x22c] ss:$16 sps:$4 sm:$0xff]  }
  0x60   : > { %1049 = vmatpush1.bf16.msra.mxu0 %v1669_v30  ;;  %v1709_v59 = vld [vmem:[%s2107_s15 + $0x324] ss:$16 sps:$4 sm:$0xff]   ;;  %v1717_v0 = vld [vmem:[%s2107_s15 + $0x100] ss:$16 sps:$4 sm:$0xff]   ;;  %v1761_v30 = vld [vmem:[%s2107_s15 + $0x28] ss:$16 sps:$4 sm:$0xff]  }
  0x61   : > { %1092 = vmatpush1.bf16.msra.mxu1 %v1670_v31  ;;  %1050 = vmatprep.subr.bf16.mxu0 %v1671_v32  ;;  %v1713_v62 = vld [vmem:[%s2107_s15 + $0x104] ss:$16 sps:$4 sm:$0xff]   ;;  %v1718_v1 = vld [vmem:[%s2107_s15 + $0x300] ss:$16 sps:$4 sm:$0xff]   ;;  %v1764_v31 = vld [vmem:[%s2107_s15 + $0x228] ss:$16 sps:$4 sm:$0xff]  }
  0x62   : > { %1093 = vmatprep.subr.bf16.mxu1 %v1673_v33  ;;  %v1715_v63 = vld [vmem:[%s2107_s15 + $0x304] ss:$16 sps:$4 sm:$0xff]   ;;  %v2179_v4 = vld [vmem:[#allocation3] ss:$16 sps:$4 sm:$0xff]   ;;  %v1769_v32 = vld [vmem:[%s2107_s15 + $0xc] ss:$16 sps:$4 sm:$0xff]  }
  0x63   : > { %v1772_v33 = vld [vmem:[%s2107_s15 + $0x20c] ss:$16 sps:$4 sm:$0xff]   ;;  %s1278_s22 = sshll.u32 %s215_s19, 4  ;;  %s1262_s25 = scalar_lea.sflag [#allocation5], %s2103_s29  ;;  %s2251_s22 = int_to_ptr.vmem [resolvable:$true] %s1278_s22 }
  0x64   : > { %1051 = vmatpush2.bf16.msra.mxu0 %v1675_v34  ;;  %v1767_v34 = vld [vmem:[%s2107_s15 + $0x8] ss:$16 sps:$4 sm:$0xff]   ;;  %s1875_s28 = scalar_lea.vmem %s2251_s22, 512  ;;  %p2323_p12 = scmp.ne.s32.totalorder %s2316_s20, 0 }
  0x65   : > { %1094 = vmatpush2.bf16.msra.mxu1 %v1676_v35  ;;  %1052 = vmatprep.subr.bf16.mxu0 %v1677_v36  ;;  %v1770_v35 = vld [vmem:[%s2107_s15 + $0x208] ss:$16 sps:$4 sm:$0xff]   ;;  %v1775_v36 = vld [vmem:[%s2107_s15 + $0x1ec] ss:$16 sps:$4 sm:$0xff]   ;;  %p1876_p3 = scmp.ne.s32.totalorder %s2251_s22, %s1875_s28  ;;  %s1966_s12 = smov [#allocation8]  }
  0x66   : > { %1095 = vmatprep.subr.bf16.mxu1 %v1679_v37  ;;  %v1778_v37 = vld [vmem:[%s2107_s15 + $0x3ec] ss:$16 sps:$4 sm:$0xff]   ;;  %s1879_s24 = sshll.u32 %s1966_s12, 4  ;;  %s1880_s24 = int_to_ptr.vmem [resolvable:$false] %s1879_s24 }
  0x67   : > { %p1877_p13 = pnand %p1876_p3, %p2323_p12  ;;  %s1881_s3 = scalar_lea.vmem %s1880_s24, 1024 }
  0x68   : > { %1053 = vmatpush2.bf16.msra.mxu0 %v1681_v38  ;;  %v1773_v38 = vld [vmem:[%s2107_s15 + $0x1e8] ss:$16 sps:$4 sm:$0xff]   ;;  %p1882_p6 = scmp.lt.s32.totalorder %s2251_s22, %s1880_s24  ;;  %p1883_p8 = scmp.lt.s32.totalorder %s1881_s3, %s1875_s28 }
  0x69   : > { %1096 = vmatpush2.bf16.msra.mxu1 %v1682_v39  ;;  %1054 = vmatprep.subr.bf16.mxu0 %v1683_v40  ;;  %v1776_v39 = vld [vmem:[%s2107_s15 + $0x3e8] ss:$16 sps:$4 sm:$0xff]   ;;  %v1781_v40 = vld [vmem:[%s2107_s15 + $0x1cc] ss:$16 sps:$4 sm:$0xff]   ;;  %p1878_p4 = pneg %p1877_p13 }
  0x6a   : > { %1097 = vmatprep.subr.bf16.mxu1 %v1685_v41  ;;  %v1784_v41 = vld [vmem:[%s2107_s15 + $0x3cc] ss:$16 sps:$4 sm:$0xff]   ;;  %p1884_p10 = por %p1883_p8, %p1882_p6 }
  0x6c   : > { %1055 = vmatpush2.bf16.msra.mxu0 %v1687_v42  ;;  %v1779_v42 = vld [vmem:[%s2107_s15 + $0x1c8] ss:$16 sps:$4 sm:$0xff]   ;;  %p1885_p0 = pnand %p1884_p10, %p1878_p4 }
  0x6d   : > { %1098 = vmatpush2.bf16.msra.mxu1 %v1688_v43  ;;  %1056 = vmatprep.subr.bf16.mxu0 %v1689_v44  ;;  %v1782_v43 = vld [vmem:[%s2107_s15 + $0x3c8] ss:$16 sps:$4 sm:$0xff]   ;;  %v1787_v44 = vld [vmem:[%s2107_s15 + $0x1ac] ss:$16 sps:$4 sm:$0xff]  }
  0x6e   : > { %1099 = vmatprep.subr.bf16.mxu1 %v1691_v45  ;;  %v1790_v45 = vld [vmem:[%s2107_s15 + $0x3ac] ss:$16 sps:$4 sm:$0xff]  }
  0x70   : > { %1057 = vmatpush2.bf16.msra.mxu0 %v1693_v46  ;;  %v1785_v46 = vld [vmem:[%s2107_s15 + $0x1a8] ss:$16 sps:$4 sm:$0xff]  }
  0x71   : > { %1100 = vmatpush2.bf16.msra.mxu1 %v1694_v47  ;;  %1058 = vmatprep.subr.bf16.mxu0 %v1695_v48  ;;  %v1788_v47 = vld [vmem:[%s2107_s15 + $0x3a8] ss:$16 sps:$4 sm:$0xff]   ;;  %v1793_v48 = vld [vmem:[%s2107_s15 + $0x18c] ss:$16 sps:$4 sm:$0xff]  }
  0x72   : > { %1101 = vmatprep.subr.bf16.mxu1 %v1697_v50  ;;  %v1791_v50 = vld [vmem:[%s2107_s15 + $0x188] ss:$16 sps:$4 sm:$0xff]  }
  0x74   : > { %1059 = vmatpush2.bf16.msra.mxu0 %v1699_v52  ;;  %v1799_v52 = vld [vmem:[%s2107_s15 + $0x16c] ss:$16 sps:$4 sm:$0xff]  }
  0x75   : > { %1102 = vmatpush2.bf16.msra.mxu1 %v1700_v53  ;;  %1060 = vmatprep.subr.bf16.mxu0 %v1701_v54  ;;  %v1802_v53 = vld [vmem:[%s2107_s15 + $0x36c] ss:$16 sps:$4 sm:$0xff]   ;;  %v1797_v54 = vld [vmem:[%s2107_s15 + $0x168] ss:$16 sps:$4 sm:$0xff]  }
  0x76   : > { %1103 = vmatprep.subr.bf16.mxu1 %v1703_v55  ;;  %v1800_v55 = vld [vmem:[%s2107_s15 + $0x368] ss:$16 sps:$4 sm:$0xff]  }
  0x78   : > { %1061 = vmatpush2.bf16.msra.mxu0 %v1705_v56  ;;  %v1805_v56 = vld [vmem:[%s2107_s15 + $0x14c] ss:$16 sps:$4 sm:$0xff]  }
  0x79   : > { %1104 = vmatpush2.bf16.msra.mxu1 %v1706_v57  ;;  %1062 = vmatprep.subr.bf16.mxu0 %v1707_v58  ;;  %v1808_v57 = vld [vmem:[%s2107_s15 + $0x34c] ss:$16 sps:$4 sm:$0xff]   ;;  %v1803_v58 = vld [vmem:[%s2107_s15 + $0x148] ss:$16 sps:$4 sm:$0xff]  }
  0x7a   : > { %1105 = vmatprep.subr.bf16.mxu1 %v1709_v59  ;;  %v1806_v59 = vld [vmem:[%s2107_s15 + $0x348] ss:$16 sps:$4 sm:$0xff]  }
  0x7c   : > { %1063 = vmatpush2.bf16.msra.mxu0 %v1711_v60  ;;  %v1811_v60 = vld [vmem:[%s2107_s15 + $0x12c] ss:$16 sps:$4 sm:$0xff]  }
  0x7d   : > { %1106 = vmatpush2.bf16.msra.mxu1 %v1712_v61  ;;  %1064 = vmatprep.subr.bf16.mxu0 %v1713_v62  ;;  %v1814_v61 = vld [vmem:[%s2107_s15 + $0x32c] ss:$16 sps:$4 sm:$0xff]   ;;  %v1809_v62 = vld [vmem:[%s2107_s15 + $0x128] ss:$16 sps:$4 sm:$0xff]  }
  0x7e   : > { %1107 = vmatprep.subr.bf16.mxu1 %v1715_v63  ;;  %v1812_v63 = vld [vmem:[%s2107_s15 + $0x328] ss:$16 sps:$4 sm:$0xff]  }
  0x80   : > { %1065 = vmatpush2.bf16.msra.mxu0 %v1717_v0  ;;  %v1817_v0 = vld [vmem:[%s2107_s15 + $0x10c] ss:$16 sps:$4 sm:$0xff]  }
  0x81   : > { %1108 = vmatpush2.bf16.msra.mxu1 %v1718_v1  ;;  %1120 = vmatprep.subr.bf16.mxu0 %v1727_v2  ;;  %v1820_v1 = vld [vmem:[%s2107_s15 + $0x30c] ss:$16 sps:$4 sm:$0xff]   ;;  %v1815_v2 = vld [vmem:[%s2107_s15 + $0x108] ss:$16 sps:$4 sm:$0xff]  }
  0x82   : > { %1163 = vmatprep.subr.bf16.mxu1 %v1730_v3  ;;  %v1818_v3 = vld [vmem:[%s2107_s15 + $0x308] ss:$16 sps:$4 sm:$0xff]  }
  0x83   : > { %1067 = vmatmul.mubr.bf16.vlgmr.msra.gmra.mxu0 %v2179_v4 }
  0x84   : > { %1110 = vmatmul.mubr.bf16.vlgmr.msra.gmra.mxu1 %v2181_v5  ;;  %1121 = vmatpush1.bf16.msra.mxu0 %v1725_v6 }
  0x85   : > { %1164 = vmatpush1.bf16.msra.mxu1 %v1728_v7  ;;  %1122 = vmatprep.subr.bf16.mxu0 %v1733_v8 }
  0x86   : > { %1165 = vmatprep.subr.bf16.mxu1 %v1736_v9  ;;  %1152 = vmatprep.mubr.bf16.mxu0 %v1721_v49  ;;  %v1796_v49 = vld [vmem:[%s2107_s15 + $0x38c] ss:$16 sps:$4 sm:$0xff]  }
  0x87   : > { %1195 = vmatprep.mubr.bf16.mxu1 %v1724_v51  ;;  %v1794_v51 = vld [vmem:[%s2107_s15 + $0x388] ss:$16 sps:$4 sm:$0xff]  }
  0x88   : > { %1123 = vmatpush1.bf16.msra.mxu0 %v1731_v10 }
  0x89   : > { %1166 = vmatpush1.bf16.msra.mxu1 %v1734_v11  ;;  %1124 = vmatprep.subr.bf16.mxu0 %v1739_v12 }
  0x8a   : > { %1167 = vmatprep.subr.bf16.mxu1 %v1742_v13 }
  0x8c   : > { %1125 = vmatpush1.bf16.msra.mxu0 %v1737_v14 }
  0x8d   : > { %1168 = vmatpush1.bf16.msra.mxu1 %v1740_v15  ;;  %1126 = vmatprep.subr.bf16.mxu0 %v1745_v16 }
  0x8e   : > { %1169 = vmatprep.subr.bf16.mxu1 %v1748_v17 }
  0x90   : > { %1127 = vmatpush1.bf16.msra.mxu0 %v1743_v18 }
  0x91   : > { %1170 = vmatpush1.bf16.msra.mxu1 %v1746_v19  ;;  %1128 = vmatprep.subr.bf16.mxu0 %v1751_v20 }
  0x92   : > { %1171 = vmatprep.subr.bf16.mxu1 %v1754_v21 }
  0x94   : > { %1129 = vmatpush1.bf16.msra.mxu0 %v1749_v22 }
  0x95   : > { %1172 = vmatpush1.bf16.msra.mxu1 %v1752_v23  ;;  %1130 = vmatprep.subr.bf16.mxu0 %v1757_v24 }
  0x96   : > { %1173 = vmatprep.subr.bf16.mxu1 %v1760_v25 }
  0x98   : > { %1131 = vmatpush1.bf16.msra.mxu0 %v1755_v26 }
  0x99   : > { %1174 = vmatpush1.bf16.msra.mxu1 %v1758_v27  ;;  %1132 = vmatprep.subr.bf16.mxu0 %v1763_v28 }
  0x9a   : > { %1175 = vmatprep.subr.bf16.mxu1 %v1766_v29 }
  0x9c   : > { %1133 = vmatpush1.bf16.msra.mxu0 %v1761_v30 }
  0x9d   : > { %1176 = vmatpush1.bf16.msra.mxu1 %v1764_v31  ;;  %1134 = vmatprep.subr.bf16.mxu0 %v1769_v32 }
  0x9e   : > { %1177 = vmatprep.subr.bf16.mxu1 %v1772_v33 }
  0xa0   : > { %1135 = vmatpush1.bf16.msra.mxu0 %v1767_v34 }
  0xa1   : > { %1178 = vmatpush1.bf16.msra.mxu1 %v1770_v35  ;;  %1136 = vmatprep.subr.bf16.mxu0 %v1775_v36 }
  0xa2   : > { %1179 = vmatprep.subr.bf16.mxu1 %v1778_v37 }
  0xa4   : > { %1137 = vmatpush2.bf16.msra.mxu0 %v1773_v38 }
  0xa5   : > { %1180 = vmatpush2.bf16.msra.mxu1 %v1776_v39  ;;  %1138 = vmatprep.subr.bf16.mxu0 %v1781_v40 }
  0xa6   : > { %1181 = vmatprep.subr.bf16.mxu1 %v1784_v41 }
  0xa8   : > { %1139 = vmatpush2.bf16.msra.mxu0 %v1779_v42 }
  0xa9   : > { %1182 = vmatpush2.bf16.msra.mxu1 %v1782_v43  ;;  %1140 = vmatprep.subr.bf16.mxu0 %v1787_v44 }
  0xaa   : > { %1183 = vmatprep.subr.bf16.mxu1 %v1790_v45 }
  0xac   : > { %1141 = vmatpush2.bf16.msra.mxu0 %v1785_v46 }
  0xad   : > { %1184 = vmatpush2.bf16.msra.mxu1 %v1788_v47  ;;  %1142 = vmatprep.subr.bf16.mxu0 %v1793_v48 }
  0xae   : > { %1185 = vmatprep.subr.bf16.mxu1 %v1796_v49 }
  0xb0   : > { %1143 = vmatpush2.bf16.msra.mxu0 %v1791_v50 }
  0xb1   : > { %1186 = vmatpush2.bf16.msra.mxu1 %v1794_v51  ;;  %1144 = vmatprep.subr.bf16.mxu0 %v1799_v52 }
  0xb2   : > { %1187 = vmatprep.subr.bf16.mxu1 %v1802_v53 }
  0xb4   : > { %1145 = vmatpush2.bf16.msra.mxu0 %v1797_v54 }
  0xb5   : > { %1188 = vmatpush2.bf16.msra.mxu1 %v1800_v55  ;;  %1146 = vmatprep.subr.bf16.mxu0 %v1805_v56 }
  0xb6   : > { %1189 = vmatprep.subr.bf16.mxu1 %v1808_v57 }
  0xb8   : > { %1147 = vmatpush2.bf16.msra.mxu0 %v1803_v58 }
  0xb9   : > { %1190 = vmatpush2.bf16.msra.mxu1 %v1806_v59  ;;  %1148 = vmatprep.subr.bf16.mxu0 %v1811_v60 }
  0xba   : > { %1191 = vmatprep.subr.bf16.mxu1 %v1814_v61 }
  0xbc   : > { %1149 = vmatpush2.bf16.msra.mxu0 %v1809_v62 }
  0xbd   : > { %1192 = vmatpush2.bf16.msra.mxu1 %v1812_v63  ;;  %1150 = vmatprep.subr.bf16.mxu0 %v1817_v0 }
  0xbe   : > { %1193 = vmatprep.subr.bf16.mxu1 %v1820_v1 }
  0xc0   : > { %1151 = vmatpush2.bf16.msra.mxu0 %v1815_v2 }
  0xc1   : > { %1194 = vmatpush2.bf16.msra.mxu1 %v1818_v3 }
  0xc3   : > { %1153 = vmatmul.mubr.bf16.vlgmr.msra.gmra.mxu0 %v2179_v4 }
  0xc4   : > { %1196 = vmatmul.mubr.bf16.vlgmr.msra.gmra.mxu1 %v2181_v5 }
 0x143   : > { %v1068_v6 = vpop.f32.mrf.mxu0 }
 0x144   : > { %v1111_v7 = vpop.f32.mrf.mxu1 }
 0x145   : > { %v1112_v8 = vadd.f32 %v1111_v7, %v1068_v6  ;;  %v1070_v9 = vpop.f32.mrf.mxu0 }
 0x146   : > { %v1113_v10 = vpop.f32.mrf.mxu1 }
 0x147   : > { %v1114_v11 = vadd.f32 %v1113_v10, %v1070_v9  ;;  %v1072_v12 = vpop.f32.mrf.mxu0 }
 0x148   : > { %v1115_v13 = vpop.f32.mrf.mxu1 }
 0x149   : > { %v1539_v14 = vpack.c.bf16 %v1114_v11, %v1112_v8  ;;  %v1074_v15 = vpop.f32.mrf.mxu0  ;;  %v1116_v17 = vadd.f32 %v1115_v13, %v1072_v12 }
 0x14a   : > { %v1117_v16 = vpop.f32.mrf.mxu1 }
 0x14b   : > { %1257 = vst [vmem:[%s215_s19] sm:$0xff] %v1539_v14  ;;  %v1118_v18 = vadd.f32 %v1117_v16, %v1074_v15 }
 0x14d   : > { %v1541_v4 = vpack.c.bf16 %v1118_v18, %v1116_v17 }
 0x14f   : > { %1259 = vst [vmem:[%s215_s19 + $0x10] sm:$0xff] %v1541_v4 }
 0x183   : > { %v1154_v5 = vpop.f32.mrf.mxu0 }
 0x184   : > { %v1197_v19 = vpop.f32.mrf.mxu1 }
 0x185   : > { %v1156_v20 = vpop.f32.mrf.mxu0  ;;  %v1198_v22 = vadd.f32 %v1197_v19, %v1154_v5 }
 0x186   : > { %v1199_v21 = vpop.f32.mrf.mxu1 }
 0x187   : > { %v1200_v23 = vadd.f32 %v1199_v21, %v1156_v20  ;;  %v1158_v24 = vpop.f32.mrf.mxu0 }
 0x188   : > { %v1201_v25 = vpop.f32.mrf.mxu1 }
 0x189   : > { %v1540_v26 = vpack.c.bf16 %v1200_v23, %v1198_v22  ;;  %v1160_v27 = vpop.f32.mrf.mxu0  ;;  %v1202_v29 = vadd.f32 %v1201_v25, %v1158_v24 }
 0x18a   : > { %v1203_v28 = vpop.f32.mrf.mxu1 }
 0x18b   : > { %1258 = vst [vmem:[%s215_s19 + $0x8] sm:$0xff] %v1540_v26  ;;  %v1204_v30 = vadd.f32 %v1203_v28, %v1160_v27 }
 0x18d   : > { %v1542_v31 = vpack.c.bf16 %v1204_v30, %v1202_v29 }
 0x18f   : > { %1260 = vst [vmem:[%s215_s19 + $0x18] sm:$0xff] %v1542_v31 }
 0x190   : > { %1888 = shalt.err (!%p1885_p0)
}
 0x191   : > { %s1889_s4 = scalar_lea.hbm %s2256_s23, 512  ;;  %s1893_s5 = scalar_lea.hbm %s2306_s2, 1024 }
 0x192   : > { %p1890_p1 = scmp.ne.s32.totalorder %s2256_s23, %s1889_s4  ;;  %p1894_p9 = scmp.lt.s32.totalorder %s2256_s23, %s2306_s2 }
 0x193   : > { %p1895_p11 = scmp.lt.s32.totalorder %s1893_s5, %s1889_s4 }
 0x194   : > { %p1891_p5 = pnand %p1890_p1, %p2323_p12 }
 0x195   : > { %p1896_p2 = por %p1895_p11, %p1894_p9 }
 0x196   : > { %p1892_p7 = pneg %p1891_p5 }
 0x198   : > { %p1897_p3 = pnand %p1896_p2, %p1892_p7 }
 0x19a   : > { %1900 = shalt.err (!%p1897_p3)
}
 0x19b   : > { %s1967_s15 = smov 256   ;;  %s1968_s17 = smov 512  }
 0x19c   : > { %s1969_s19 = smov 16  }
 0x19d   : > { %1550 = dma.vmem_to_hbm [thread:$0]  (%p2323_p12), %s2251_s22, 512, %s2256_s23, %s1262_s25, %s1967_s15, %s1968_s17, %s1969_s19  }
 0x19e PF: > { %s2324_s30 = sld [smem:[#allocation12_spill]]  ;;  %s1293_s16 = sand.u32 1, %s1939_s9  }
 0x19f   : > { %p2325_p13 = scmp.ne.s32.totalorder %s2317_s21, 0  ;;  %s1294_s18 = scalar_lea.sflag [#allocation5], %s1293_s16 }
 0x1a4   : > { %p2326_p4 = scmp.ge.s32.totalorder %s2324_s30, 2 }
 0x1a6   : > { %p1561_p6 = pnand %p2326_p4, %p2325_p13 }
 0x1a8   : > { %p1562_p8 = pneg %p1561_p6 }
 0x1aa   : > { %1934 = dma.done.wait (%p1562_p8), %s1294_s18, 512  }
 0x1ab   : > { %1936 = vsyncadd (%p1562_p8), %s1294_s18, 4294966784  ;;  %s19_s28 = sadd.s32 1, %s2324_s30   ;;  %s2327_s9 = smov %s1943_s10 }
 0x1ac   : > { %p16_p10 = scmp.ge.s32.totalorder %s19_s28, 4   ;;  %s2328_s10 = smov %s1947_s11 }
 0x1ad   : > { %s2329_s11 = smov %s2088_s14  ;;  %s2330_s12 = smov %s1955_s13 }
 0x1ae   : > { %s2331_s13 = smov %s2334_s27  ;;  %s2332_s14 = smov %s19_s28 }
 0x1af   :  { %18 = sbr.rel (!%p16_p10) target bundleno = 7 (0x7), region = 87 }
 0x1b4   :  { %1299 = vsyncpa [#allocation4], 1 }
 0x1b5   :  { %1301 = vsyncpa [#allocation4 + $0x1], 1 }
 0x1b6   :  { %1302 = vsyncpa [#allocation7], 1 }
 0x1b7   :  { %1304 = vsyncpa [#allocation7 + $0x1], 1 }
 0x1b8   :  { %1305 = vsyncpa [#allocation5], 1 }
 0x1b9   :  { %1307 = vsyncpa [#allocation5 + $0x1], 1 }

</bundles_post_ra>
